<compile_context>
chip_gen: v5e
topology: v5e:2x2
jax: 0.10.0
libtpu: 0.0.40
codegen_flags: <defaults>
</compile_context>

<pallas_src>
import functools

import jax
import jax.numpy as jnp
from jax import lax
from jax.experimental import pallas as pl
from jax.experimental.pallas import tpu as pltpu

RRELU_SLOPE = (1.0 / 8.0 + 1.0 / 3.0) / 2.0  # eval-mode rrelu negative slope
LANE = 128
SUBLANE = 8
MXU_M_TARGET = 256   # target M rows per conv matmul (v6e/v7x 256-wide MXU)
MAX_TB = 64          # cap on batch rows folded into one grid step


def _cdiv(a, b):
    return -(-a // b)


def _round_up(x, m):
    return _cdiv(x, m) * m


def _pick_block_batch(batch, l_out_final):
    """Rows per grid step: enough to fill MXU M, but keep >=2 grid steps."""
    tb = min(batch, max(1, _cdiv(MXU_M_TARGET, l_out_final)), MAX_TB)
    # v7x has 2 TensorCores: a 1-step grid would idle one core, so split.
    if tb >= batch and batch > 1:
        tb = _cdiv(batch, 2)
    return tb


def _cnn_intent_kernel(n_layers, kernel_size, seq_len, tb, x_ref, *refs):
    """Args (after the bound statics):

    x_ref:  [TB, L_pad, E_pad] bf16   embedded tokens for TB batch rows.
    refs:   w0, b0, ..., w_{n-1}, b_{n-1}, wfc, bfc, out_ref
      w_i:  [K*C_in_pad, C_out_pad] bf16   (conv weight, tap-folded 2-D)
      b_i:  [1, C_out_pad]          f32
      wfc:  [C_last_pad, O_pad]     f32
      bfc:  [1, O_pad]              f32
      out:  [1, TB, O_pad]          f32
    """
    conv_refs = refs[:2 * n_layers]
    wfc_ref, bfc_ref, out_ref = refs[2 * n_layers:]

    x3 = x_ref[...]                                  # [TB, L_pad, E_pad] bf16
    l_in = seq_len
    act = None                                       # 2-D [TB*l_in, C] bf16
    y = None

    # ---- Conv stack: each layer is ONE batch-folded MXU matmul. ----
    for li in range(n_layers):
        w = conv_refs[2 * li][...]                   # [K*C_in_pad, C_out_pad]
        bias = conv_refs[2 * li + 1][...]            # [1, C_out_pad] f32
        l_out = l_in - kernel_size + 1

        pieces = []
        for b in range(tb):
            if li == 0:
                taps = [x3[b, k:k + l_out, :] for k in range(kernel_size)]
            else:
                base = b * l_in
                taps = [act[base + k:base + k + l_out, :]
                        for k in range(kernel_size)]
            # lane-axis concat of the K shifted slices (128-aligned, cheap)
            pieces.append(jnp.concatenate(taps, axis=-1))
        xk = jnp.concatenate(pieces, axis=0) if tb > 1 else pieces[0]
        # [TB*l_out, K*C_in_pad] bf16  x  [K*C_in_pad, C_out_pad] bf16 -> f32
        y = jnp.dot(xk, w, preferred_element_type=jnp.float32) + bias
        y = jnp.where(y >= 0.0, y, RRELU_SLOPE * y)  # eval-mode rrelu (f32 VPU)
        if li + 1 < n_layers:
            act = y.astype(jnp.bfloat16)             # bf16 between layers
        l_in = l_out

    # ---- Max-pool over each row's valid sequence positions (f32). ----
    if tb > 1:
        pooled = jnp.concatenate(
            [jnp.max(y[b * l_in:(b + 1) * l_in, :], axis=0, keepdims=True)
             for b in range(tb)], axis=0)            # [TB, C_last_pad]
    else:
        pooled = jnp.max(y, axis=0, keepdims=True)

    # ---- Final linear (dropout = identity); kept f32, negligible cost. ----
    out = jnp.dot(pooled, wfc_ref[...],
                  preferred_element_type=jnp.float32) + bfc_ref[...]
    out_ref[...] = out[None, :, :]                   # [1, TB, O_pad]


def init_params(key, input_dim, embedding_dim, output_dim, filter_sizes,
                kernel_size):
    """Deterministic synthetic parameters matching the PyTorch module shapes."""
    keys = jax.random.split(key, 2 + 2 * len(filter_sizes) + 2)
    params = {}
    params["embedding"] = 0.1 * jax.random.normal(
        keys[0], (input_dim, embedding_dim), jnp.float32)
    conv_ws, conv_bs = [], []
    c_in = embedding_dim
    for i, c_out in enumerate(filter_sizes):
        w = 0.1 * jax.random.normal(
            keys[1 + 2 * i], (c_out, c_in, kernel_size), jnp.float32)
        b = 0.1 * jax.random.normal(keys[2 + 2 * i], (c_out,), jnp.float32)
        conv_ws.append(w)
        conv_bs.append(b)
        c_in = c_out
    params["conv_w"] = conv_ws
    params["conv_b"] = conv_bs
    params["fc_w"] = 0.1 * jax.random.normal(
        keys[-2], (output_dim, filter_sizes[-1]), jnp.float32)
    params["fc_b"] = 0.1 * jax.random.normal(
        keys[-1], (output_dim,), jnp.float32)
    return params


def cnn_intent_forward(query, params, kernel_size, block_batch=None):
    """query: int32 [B, L] token ids. Returns float32 [B, output_dim]."""
    n_layers = len(params["conv_w"])
    batch, seq_len = query.shape
    output_dim = params["fc_w"].shape[0]
    embedding_dim = params["embedding"].shape[1]

    l_out_final = seq_len - n_layers * (kernel_size - 1)
    if l_out_final <= 0:
        raise ValueError("seq_len too short for the conv stack "
                         "(out_len would be non-positive)")

    tb = block_batch if block_batch is not None else _pick_block_batch(
        batch, l_out_final)
    n_steps = _cdiv(batch, tb)
    batch_pad = n_steps * tb

    e_pad = _round_up(embedding_dim, LANE)
    l_pad = _round_up(seq_len, SUBLANE)
    o_pad = _round_up(output_dim, LANE)

    # ---- Embedding gather in the wrapper (XLA), bf16, padded. ----
    # Zero padding is safe: padded channels carry zero weights downstream,
    # padded sequence rows are never read by the tap slices, and padded batch
    # rows are sliced off below.
    x = jnp.take(params["embedding"].astype(jnp.float32), query, axis=0)
    x = x.astype(jnp.bfloat16)
    x = jnp.pad(x, ((0, batch_pad - batch),
                    (0, l_pad - seq_len),
                    (0, e_pad - embedding_dim)))

    inputs = [x]
    in_specs = [pl.BlockSpec((tb, l_pad, e_pad), lambda i: (i, 0, 0))]

    # ---- Pre-fold conv weights: [C_out,C_in,K] -> [K*C_in_pad, C_out_pad]. ----
    c_in, c_in_pad = embedding_dim, e_pad
    for w, b in zip(params["conv_w"], params["conv_b"]):
        c_out = w.shape[0]
        c_out_pad = _round_up(c_out, LANE)
        wk = jnp.transpose(w, (2, 1, 0)).astype(jnp.float32)     # [K, C_in, C_out]
        wk_full = jnp.zeros((kernel_size, c_in_pad, c_out_pad), jnp.float32)
        wk_full = wk_full.at[:, :c_in, :c_out].set(wk)
        w2d = wk_full.reshape(kernel_size * c_in_pad, c_out_pad
                              ).astype(jnp.bfloat16)
        bias = jnp.zeros((1, c_out_pad), jnp.float32).at[0, :c_out].set(
            b.astype(jnp.float32))
        inputs += [w2d, bias]
        in_specs += [pl.BlockSpec(w2d.shape, lambda i: (0, 0)),
                     pl.BlockSpec(bias.shape, lambda i: (0, 0))]
        c_in, c_in_pad = c_out, c_out_pad

    fcw = jnp.zeros((c_in_pad, o_pad), jnp.float32)
    fcw = fcw.at[:c_in, :output_dim].set(
        jnp.transpose(params["fc_w"]).astype(jnp.float32))
    fcb = jnp.zeros((1, o_pad), jnp.float32).at[0, :output_dim].set(
        params["fc_b"].astype(jnp.float32))
    inputs += [fcw, fcb]
    in_specs += [pl.BlockSpec(fcw.shape, lambda i: (0, 0)),
                 pl.BlockSpec(fcb.shape, lambda i: (0, 0))]

    kernel = functools.partial(_cnn_intent_kernel, n_layers, kernel_size,
                               seq_len, tb)

    out = pl.pallas_call(
        kernel,
        out_shape=jax.ShapeDtypeStruct((n_steps, tb, o_pad), jnp.float32),
        grid_spec=pltpu.PrefetchScalarGridSpec(
            num_scalar_prefetch=0,
            grid=(n_steps,),
            in_specs=in_specs,
            out_specs=pl.BlockSpec((1, tb, o_pad), lambda i: (i, 0, 0)),
        ),
        compiler_params=pltpu.CompilerParams(
            dimension_semantics=("parallel",)),   # megacore / v7x 2-TC sharding
    )(*inputs)

    return out.reshape(batch_pad, o_pad)[:batch, :output_dim]


def cnn_intent_reference(query, params, kernel_size):
    """Pure-JAX f32 reference (uses lax.conv) for correctness checking."""
    x = jnp.take(params["embedding"], query, axis=0)  # [B, L, E]
    for w, b in zip(params["conv_w"], params["conv_b"]):
        y = lax.conv_general_dilated(
            x, w, window_strides=(1,), padding="VALID",
            dimension_numbers=("NWC", "OIW", "NWC"))
        y = y + b[None, None, :]
        x = jnp.where(y >= 0.0, y, RRELU_SLOPE * y)
    pooled = jnp.max(x, axis=1)
    return pooled @ params["fc_w"].T + params["fc_b"]


if __name__ == "__main__":
    # Small, CNNIntent-consistent shapes (batch=8 exercises batch folding:
    # TB=4 rows per grid step, 2 grid steps).
    input_dim = 50          # vocab size
    embedding_dim = 32
    filter_sizes = (32, 64)
    kernel_size = 3
    output_dim = 8
    batch, seq_len = 8, 16

    key = jax.random.PRNGKey(0)
    pkey, qkey = jax.random.split(key)
    params = init_params(pkey, input_dim, embedding_dim, output_dim,
                         filter_sizes, kernel_size)
    query = jax.random.randint(qkey, (batch, seq_len), 0, input_dim,
                               dtype=jnp.int32)

    out = cnn_intent_forward(query, params, kernel_size)
    out = jax.block_until_ready(out)

    ref = jax.block_until_ready(cnn_intent_reference(query, params, kernel_size))
    assert out.shape == (batch, output_dim)
    # bf16 MXU operands / bf16 activations -> bf16-appropriate tolerance.
    assert jnp.allclose(out, ref, atol=1e-2, rtol=1e-2), (out, ref)

    print("KERNEL_OK")
</pallas_src>

<mosaic_0001>
module attributes {stable_mosaic.version = 11 : i64} {
  func.func @_cnn_intent_kernel(%arg0: i32, %arg1: memref<4x16x128xbf16, #tpu.memory_space<vmem>>, %arg2: memref<384x128xbf16, #tpu.memory_space<vmem>>, %arg3: memref<1x128xf32, #tpu.memory_space<vmem>>, %arg4: memref<384x128xbf16, #tpu.memory_space<vmem>>, %arg5: memref<1x128xf32, #tpu.memory_space<vmem>>, %arg6: memref<128x128xf32, #tpu.memory_space<vmem>>, %arg7: memref<1x128xf32, #tpu.memory_space<vmem>>, %arg8: memref<1x4x128xf32, #tpu.memory_space<vmem>>) attributes {dimension_semantics = [#tpu.dimension_semantics<parallel>], iteration_bounds = array<i64: 2>, scalar_prefetch = 0 : i64, scratch_operands = 0 : i64, tpu.core_type = #tpu.core_type<tc>, window_params = [{transform_indices = @transform_0, window_bounds = array<i64: 4, 16, 128>}, {pipeline_mode = #tpu.pipeline_mode<synchronous>, transform_indices = @transform_1, window_bounds = array<i64: 384, 128>}, {pipeline_mode = #tpu.pipeline_mode<synchronous>, transform_indices = @transform_2, window_bounds = array<i64: 1, 128>}, {pipeline_mode = #tpu.pipeline_mode<synchronous>, transform_indices = @transform_3, window_bounds = array<i64: 384, 128>}, {pipeline_mode = #tpu.pipeline_mode<synchronous>, transform_indices = @transform_4, window_bounds = array<i64: 1, 128>}, {pipeline_mode = #tpu.pipeline_mode<synchronous>, transform_indices = @transform_5, window_bounds = array<i64: 128, 128>}, {pipeline_mode = #tpu.pipeline_mode<synchronous>, transform_indices = @transform_6, window_bounds = array<i64: 1, 128>}, {transform_indices = @transform_7, window_bounds = array<i64: 1, 4, 128>}]} {
    %c0 = arith.constant 0 : index
    %c0_0 = arith.constant 0 : index
    %c0_1 = arith.constant 0 : index
    %0 = vector.load %arg1[%c0, %c0_0, %c0_1] : memref<4x16x128xbf16, #tpu.memory_space<vmem>>, vector<4x16x128xbf16>
    %c0_2 = arith.constant 0 : index
    %c0_3 = arith.constant 0 : index
    %1 = vector.load %arg2[%c0_2, %c0_3] : memref<384x128xbf16, #tpu.memory_space<vmem>>, vector<384x128xbf16>
    %c0_4 = arith.constant 0 : index
    %c0_5 = arith.constant 0 : index
    %2 = vector.load %arg3[%c0_4, %c0_5] : memref<1x128xf32, #tpu.memory_space<vmem>>, vector<1x128xf32>
    %3 = vector.extract_strided_slice %0 {offsets = [0, 0, 0], sizes = [1, 14, 128], strides = [1, 1, 1]} : vector<4x16x128xbf16> to vector<1x14x128xbf16>
    %4 = vector.shape_cast %3 : vector<1x14x128xbf16> to vector<14x128xbf16>
    %5 = vector.extract_strided_slice %0 {offsets = [0, 1, 0], sizes = [1, 14, 128], strides = [1, 1, 1]} : vector<4x16x128xbf16> to vector<1x14x128xbf16>
    %6 = vector.shape_cast %5 : vector<1x14x128xbf16> to vector<14x128xbf16>
    %7 = vector.extract_strided_slice %0 {offsets = [0, 2, 0], sizes = [1, 14, 128], strides = [1, 1, 1]} : vector<4x16x128xbf16> to vector<1x14x128xbf16>
    %8 = vector.shape_cast %7 : vector<1x14x128xbf16> to vector<14x128xbf16>
    %9 = tpu.concatenate %4, %6, %8 in 1 : vector<14x128xbf16>, vector<14x128xbf16>, vector<14x128xbf16> -> vector<14x384xbf16>
    %10 = vector.extract_strided_slice %0 {offsets = [1, 0, 0], sizes = [1, 14, 128], strides = [1, 1, 1]} : vector<4x16x128xbf16> to vector<1x14x128xbf16>
    %11 = vector.shape_cast %10 : vector<1x14x128xbf16> to vector<14x128xbf16>
    %12 = vector.extract_strided_slice %0 {offsets = [1, 1, 0], sizes = [1, 14, 128], strides = [1, 1, 1]} : vector<4x16x128xbf16> to vector<1x14x128xbf16>
    %13 = vector.shape_cast %12 : vector<1x14x128xbf16> to vector<14x128xbf16>
    %14 = vector.extract_strided_slice %0 {offsets = [1, 2, 0], sizes = [1, 14, 128], strides = [1, 1, 1]} : vector<4x16x128xbf16> to vector<1x14x128xbf16>
    %15 = vector.shape_cast %14 : vector<1x14x128xbf16> to vector<14x128xbf16>
    %16 = tpu.concatenate %11, %13, %15 in 1 : vector<14x128xbf16>, vector<14x128xbf16>, vector<14x128xbf16> -> vector<14x384xbf16>
    %17 = vector.extract_strided_slice %0 {offsets = [2, 0, 0], sizes = [1, 14, 128], strides = [1, 1, 1]} : vector<4x16x128xbf16> to vector<1x14x128xbf16>
    %18 = vector.shape_cast %17 : vector<1x14x128xbf16> to vector<14x128xbf16>
    %19 = vector.extract_strided_slice %0 {offsets = [2, 1, 0], sizes = [1, 14, 128], strides = [1, 1, 1]} : vector<4x16x128xbf16> to vector<1x14x128xbf16>
    %20 = vector.shape_cast %19 : vector<1x14x128xbf16> to vector<14x128xbf16>
    %21 = vector.extract_strided_slice %0 {offsets = [2, 2, 0], sizes = [1, 14, 128], strides = [1, 1, 1]} : vector<4x16x128xbf16> to vector<1x14x128xbf16>
    %22 = vector.shape_cast %21 : vector<1x14x128xbf16> to vector<14x128xbf16>
    %23 = tpu.concatenate %18, %20, %22 in 1 : vector<14x128xbf16>, vector<14x128xbf16>, vector<14x128xbf16> -> vector<14x384xbf16>
    %24 = vector.extract_strided_slice %0 {offsets = [3, 0, 0], sizes = [1, 14, 128], strides = [1, 1, 1]} : vector<4x16x128xbf16> to vector<1x14x128xbf16>
    %25 = vector.shape_cast %24 : vector<1x14x128xbf16> to vector<14x128xbf16>
    %26 = vector.extract_strided_slice %0 {offsets = [3, 1, 0], sizes = [1, 14, 128], strides = [1, 1, 1]} : vector<4x16x128xbf16> to vector<1x14x128xbf16>
    %27 = vector.shape_cast %26 : vector<1x14x128xbf16> to vector<14x128xbf16>
    %28 = vector.extract_strided_slice %0 {offsets = [3, 2, 0], sizes = [1, 14, 128], strides = [1, 1, 1]} : vector<4x16x128xbf16> to vector<1x14x128xbf16>
    %29 = vector.shape_cast %28 : vector<1x14x128xbf16> to vector<14x128xbf16>
    %30 = tpu.concatenate %25, %27, %29 in 1 : vector<14x128xbf16>, vector<14x128xbf16>, vector<14x128xbf16> -> vector<14x384xbf16>
    %31 = tpu.concatenate %9, %16, %23, %30 in 0 : vector<14x384xbf16>, vector<14x384xbf16>, vector<14x384xbf16>, vector<14x384xbf16> -> vector<56x384xbf16>
    %cst = arith.constant dense<0.000000e+00> : vector<56x128xf32>
    %32 = tpu.matmul %31, %1, %cst {dimension_numbers = #tpu.dot_dimension_numbers<[1], [0], [0], [1], [0, 0, 1, 1], [], []>} : vector<56x384xbf16>, vector<384x128xbf16>, vector<56x128xf32> -> vector<56x128xf32>
    %33 = vector.broadcast %2 : vector<1x128xf32> to vector<56x128xf32>
    %34 = arith.addf %32, %33 : vector<56x128xf32>
    %cst_6 = arith.constant 0.000000e+00 : f32
    %35 = vector.broadcast %cst_6 : f32 to vector<56x128xf32>
    %36 = arith.cmpf oge, %34, %35 : vector<56x128xf32>
    %cst_7 = arith.constant 0.229166672 : f32
    %37 = vector.broadcast %cst_7 : f32 to vector<56x128xf32>
    %38 = arith.mulf %37, %34 : vector<56x128xf32>
    %39 = arith.select %36, %34, %38 : vector<56x128xi1>, vector<56x128xf32>
    %40 = arith.truncf %39 : vector<56x128xf32> to vector<56x128xbf16>
    %c0_8 = arith.constant 0 : index
    %c0_9 = arith.constant 0 : index
    %41 = vector.load %arg4[%c0_8, %c0_9] : memref<384x128xbf16, #tpu.memory_space<vmem>>, vector<384x128xbf16>
    %c0_10 = arith.constant 0 : index
    %c0_11 = arith.constant 0 : index
    %42 = vector.load %arg5[%c0_10, %c0_11] : memref<1x128xf32, #tpu.memory_space<vmem>>, vector<1x128xf32>
    %43 = vector.extract_strided_slice %40 {offsets = [0, 0], sizes = [12, 128], strides = [1, 1]} : vector<56x128xbf16> to vector<12x128xbf16>
    %44 = vector.extract_strided_slice %40 {offsets = [1, 0], sizes = [12, 128], strides = [1, 1]} : vector<56x128xbf16> to vector<12x128xbf16>
    %45 = vector.extract_strided_slice %40 {offsets = [2, 0], sizes = [12, 128], strides = [1, 1]} : vector<56x128xbf16> to vector<12x128xbf16>
    %46 = tpu.concatenate %43, %44, %45 in 1 : vector<12x128xbf16>, vector<12x128xbf16>, vector<12x128xbf16> -> vector<12x384xbf16>
    %47 = vector.extract_strided_slice %40 {offsets = [14, 0], sizes = [12, 128], strides = [1, 1]} : vector<56x128xbf16> to vector<12x128xbf16>
    %48 = vector.extract_strided_slice %40 {offsets = [15, 0], sizes = [12, 128], strides = [1, 1]} : vector<56x128xbf16> to vector<12x128xbf16>
    %49 = vector.extract_strided_slice %40 {offsets = [16, 0], sizes = [12, 128], strides = [1, 1]} : vector<56x128xbf16> to vector<12x128xbf16>
    %50 = tpu.concatenate %47, %48, %49 in 1 : vector<12x128xbf16>, vector<12x128xbf16>, vector<12x128xbf16> -> vector<12x384xbf16>
    %51 = vector.extract_strided_slice %40 {offsets = [28, 0], sizes = [12, 128], strides = [1, 1]} : vector<56x128xbf16> to vector<12x128xbf16>
    %52 = vector.extract_strided_slice %40 {offsets = [29, 0], sizes = [12, 128], strides = [1, 1]} : vector<56x128xbf16> to vector<12x128xbf16>
    %53 = vector.extract_strided_slice %40 {offsets = [30, 0], sizes = [12, 128], strides = [1, 1]} : vector<56x128xbf16> to vector<12x128xbf16>
    %54 = tpu.concatenate %51, %52, %53 in 1 : vector<12x128xbf16>, vector<12x128xbf16>, vector<12x128xbf16> -> vector<12x384xbf16>
    %55 = vector.extract_strided_slice %40 {offsets = [42, 0], sizes = [12, 128], strides = [1, 1]} : vector<56x128xbf16> to vector<12x128xbf16>
    %56 = vector.extract_strided_slice %40 {offsets = [43, 0], sizes = [12, 128], strides = [1, 1]} : vector<56x128xbf16> to vector<12x128xbf16>
    %57 = vector.extract_strided_slice %40 {offsets = [44, 0], sizes = [12, 128], strides = [1, 1]} : vector<56x128xbf16> to vector<12x128xbf16>
    %58 = tpu.concatenate %55, %56, %57 in 1 : vector<12x128xbf16>, vector<12x128xbf16>, vector<12x128xbf16> -> vector<12x384xbf16>
    %59 = tpu.concatenate %46, %50, %54, %58 in 0 : vector<12x384xbf16>, vector<12x384xbf16>, vector<12x384xbf16>, vector<12x384xbf16> -> vector<48x384xbf16>
    %cst_12 = arith.constant dense<0.000000e+00> : vector<48x128xf32>
    %60 = tpu.matmul %59, %41, %cst_12 {dimension_numbers = #tpu.dot_dimension_numbers<[1], [0], [0], [1], [0, 0, 1, 1], [], []>} : vector<48x384xbf16>, vector<384x128xbf16>, vector<48x128xf32> -> vector<48x128xf32>
    %61 = vector.broadcast %42 : vector<1x128xf32> to vector<48x128xf32>
    %62 = arith.addf %60, %61 : vector<48x128xf32>
    %cst_13 = arith.constant 0.000000e+00 : f32
    %63 = vector.broadcast %cst_13 : f32 to vector<48x128xf32>
    %64 = arith.cmpf oge, %62, %63 : vector<48x128xf32>
    %cst_14 = arith.constant 0.229166672 : f32
    %65 = vector.broadcast %cst_14 : f32 to vector<48x128xf32>
    %66 = arith.mulf %65, %62 : vector<48x128xf32>
    %67 = arith.select %64, %62, %66 : vector<48x128xi1>, vector<48x128xf32>
    %68 = vector.extract_strided_slice %67 {offsets = [0, 0], sizes = [12, 128], strides = [1, 1]} : vector<48x128xf32> to vector<12x128xf32>
    %cst_15 = arith.constant dense<0xFF800000> : vector<128xf32>
    %69 = vector.multi_reduction <maximumf>, %68, %cst_15 [0] : vector<12x128xf32> to vector<128xf32>
    %70 = vector.shape_cast %69 : vector<128xf32> to vector<1x128xf32>
    %71 = vector.extract_strided_slice %67 {offsets = [12, 0], sizes = [12, 128], strides = [1, 1]} : vector<48x128xf32> to vector<12x128xf32>
    %cst_16 = arith.constant dense<0xFF800000> : vector<128xf32>
    %72 = vector.multi_reduction <maximumf>, %71, %cst_16 [0] : vector<12x128xf32> to vector<128xf32>
    %73 = vector.shape_cast %72 : vector<128xf32> to vector<1x128xf32>
    %74 = vector.extract_strided_slice %67 {offsets = [24, 0], sizes = [12, 128], strides = [1, 1]} : vector<48x128xf32> to vector<12x128xf32>
    %cst_17 = arith.constant dense<0xFF800000> : vector<128xf32>
    %75 = vector.multi_reduction <maximumf>, %74, %cst_17 [0] : vector<12x128xf32> to vector<128xf32>
    %76 = vector.shape_cast %75 : vector<128xf32> to vector<1x128xf32>
    %77 = vector.extract_strided_slice %67 {offsets = [36, 0], sizes = [12, 128], strides = [1, 1]} : vector<48x128xf32> to vector<12x128xf32>
    %cst_18 = arith.constant dense<0xFF800000> : vector<128xf32>
    %78 = vector.multi_reduction <maximumf>, %77, %cst_18 [0] : vector<12x128xf32> to vector<128xf32>
    %79 = vector.shape_cast %78 : vector<128xf32> to vector<1x128xf32>
    %80 = tpu.concatenate %70, %73, %76, %79 in 0 : vector<1x128xf32>, vector<1x128xf32>, vector<1x128xf32>, vector<1x128xf32> -> vector<4x128xf32>
    %c0_19 = arith.constant 0 : index
    %c0_20 = arith.constant 0 : index
    %81 = vector.load %arg6[%c0_19, %c0_20] : memref<128x128xf32, #tpu.memory_space<vmem>>, vector<128x128xf32>
    %cst_21 = arith.constant dense<0.000000e+00> : vector<4x128xf32>
    %82 = tpu.matmul %80, %81, %cst_21 {dimension_numbers = #tpu.dot_dimension_numbers<[1], [0], [0], [1], [0, 0, 1, 1], [], []>} : vector<4x128xf32>, vector<128x128xf32>, vector<4x128xf32> -> vector<4x128xf32>
    %c0_22 = arith.constant 0 : index
    %c0_23 = arith.constant 0 : index
    %83 = vector.load %arg7[%c0_22, %c0_23] : memref<1x128xf32, #tpu.memory_space<vmem>>, vector<1x128xf32>
    %84 = vector.broadcast %83 : vector<1x128xf32> to vector<4x128xf32>
    %85 = arith.addf %82, %84 : vector<4x128xf32>
    %86 = vector.shape_cast %85 : vector<4x128xf32> to vector<1x4x128xf32>
    %c0_24 = arith.constant 0 : index
    %c0_25 = arith.constant 0 : index
    %c0_26 = arith.constant 0 : index
    %87 = vector.load %arg8[%c0_24, %c0_25, %c0_26] : memref<1x4x128xf32, #tpu.memory_space<vmem>>, vector<1x4x128xf32>
    tpu.vector_store %arg8[%c0_24, %c0_25, %c0_26], %86 {strides = array<i32>} : memref<1x4x128xf32, #tpu.memory_space<vmem>>, vector<1x4x128xf32>,
    return
  }
  func.func @transform_0(%arg0: i32) -> (i32, i32, i32) {
    %c0_i32 = arith.constant 0 : i32
    %c0_i32_0 = arith.constant 0 : i32
    %c0_i32_1 = arith.constant 0 : i32
    return %arg0, %c0_i32, %c0_i32_0 : i32, i32, i32
  }
  func.func @transform_1(%arg0: i32) -> (i32, i32) {
    %c0_i32 = arith.constant 0 : i32
    %c0_i32_0 = arith.constant 0 : i32
    %c0_i32_1 = arith.constant 0 : i32
    return %c0_i32, %c0_i32_0 : i32, i32
  }
  func.func @transform_2(%arg0: i32) -> (i32, i32) {
    %c0_i32 = arith.constant 0 : i32
    %c0_i32_0 = arith.constant 0 : i32
    %c0_i32_1 = arith.constant 0 : i32
    return %c0_i32, %c0_i32_0 : i32, i32
  }
  func.func @transform_3(%arg0: i32) -> (i32, i32) {
    %c0_i32 = arith.constant 0 : i32
    %c0_i32_0 = arith.constant 0 : i32
    %c0_i32_1 = arith.constant 0 : i32
    return %c0_i32, %c0_i32_0 : i32, i32
  }
  func.func @transform_4(%arg0: i32) -> (i32, i32) {
    %c0_i32 = arith.constant 0 : i32
    %c0_i32_0 = arith.constant 0 : i32
    %c0_i32_1 = arith.constant 0 : i32
    return %c0_i32, %c0_i32_0 : i32, i32
  }
  func.func @transform_5(%arg0: i32) -> (i32, i32) {
    %c0_i32 = arith.constant 0 : i32
    %c0_i32_0 = arith.constant 0 : i32
    %c0_i32_1 = arith.constant 0 : i32
    return %c0_i32, %c0_i32_0 : i32, i32
  }
  func.func @transform_6(%arg0: i32) -> (i32, i32) {
    %c0_i32 = arith.constant 0 : i32
    %c0_i32_0 = arith.constant 0 : i32
    %c0_i32_1 = arith.constant 0 : i32
    return %c0_i32, %c0_i32_0 : i32, i32
  }
  func.func @transform_7(%arg0: i32) -> (i32, i32, i32) {
    %c0_i32 = arith.constant 0 : i32
    %c0_i32_0 = arith.constant 0 : i32
    %c0_i32_1 = arith.constant 0 : i32
    return %arg0, %c0_i32, %c0_i32_0 : i32, i32, i32
  }
}

</mosaic_0001>

<bundles_post_ra>
// kernel: tpu_custom_call.1
= control target key start
LH: loop header
LB: loop body
LE: loop exit
PB: predicated region body
PF: predicated region fallthrough
CT: control target
= control target key end

     0   :  { %s2269_s0 = inlined_call_operand.hbm [shape: bf16[8,16,128], index: 0, kind: input, shape index: {}]   ;;  %s2270_s1 = inlined_call_operand.hbm [shape: bf16[384,128], index: 1, kind: input, shape index: {}]   ;;  %s2271_s2 = inlined_call_operand.vmem [shape: f32[1,128], index: 2, kind: input, shape index: {}]   ;;  %s2272_s3 = inlined_call_operand.hbm [shape: bf16[384,128], index: 3, kind: input, shape index: {}]   ;;  %s2273_s4 = inlined_call_operand.vmem [shape: f32[1,128], index: 4, kind: input, shape index: {}]   ;;  %s2274_s5 = inlined_call_operand.hbm [shape: f32[128,128], index: 5, kind: input, shape index: {}]   ;;  %s2275_s6 = inlined_call_operand.vmem [shape: f32[1,128], index: 6, kind: input, shape index: {}]   ;;  %s2276_s7 = inlined_call_operand.hbm [shape: f32[2,4,128], index: 7, kind: output, shape index: {}]  }
   0x1   :  { %2279 = sst [smem:[#allocation15_spill]] %s2270_s1 }
   0x2   :  { %12 = vsyncpa [#allocation3], 0 }
   0x3   :  { %14 = vsyncpa [#allocation3 + $0x1], 0 }
   0x4   :  { %15 = vsyncpa [#allocation6], 0 }
   0x5   :  { %16 = vsyncpa [#allocation9], 0 }
   0x6   :  { %17 = vsyncpa [#allocation4], 0 }
   0x7   :  { %19 = vsyncpa [#allocation4 + $0x1], 0  ;;  %s1979_s24 = smov 0   ;;  %s1981_s25 = smov 0  }
   0x8   :  { %s1983_s26 = smov 0   ;;  %s1985_s27 = smov 0  }
   0x9 LB: > { %s2000_s28 = sadd.s32 4294967295, %s1930_s27   ;;  %s1361_s29 = sadd.s32 4294967294, %s1930_s27   ;;  %s1930_s27 = sphi %s1985_s27, %s2293_s27   ;;  %s1926_s26 = sphi %s1983_s26, %s2292_s26   ;;  %s1922_s25 = sphi %s1981_s25, %s2291_s25   ;;  %s1918_s24 = sphi %s1979_s24, %s2290_s24  }
   0xa   : > { %p45_p0 = scmp.ne.s32.totalorder %s1922_s25, %s1918_s24  ;;  %p46_p1 = scmp.eq.s32.totalorder %s2000_s28, 0 }
   0xb   : > { %p195_p2 = scmp.eq.s32.totalorder %s2000_s28, 1  ;;  %p201_p3 = scmp.eq.s32.totalorder %s1361_s29, 1 }
   0xc   : > { %p2009_p4 = por %p46_p1, %p45_p0  ;;  %p1362_p5 = scmp.ge.s32.totalorder %s1930_s27, 1 }
   0xd   : > { %p2014_p6 = por %p201_p3, %p45_p0  ;;  %p208_p7 = scmp.lt.s32.totalorder %s1930_s27, 3 }
   0xe   : > { %s2282_s1 = sld [smem:[#allocation15_spill]]  ;;  %s1932_s13 = smov [#allocation5]  }
   0xf   : > { %p2022_p8 = pnand %p1362_p5, %p208_p7  ;;  %s221_s14 = sshll.u32 %s1932_s13, 4  ;;  %s222_s14 = int_to_ptr.vmem [resolvable:$true] %s221_s14 }
  0x10   : > { %s236_s18 = sshll.u32 %s2272_s3, 4  ;;  %s2277_s19 = smov 64   ;;  %s237_s18 = int_to_ptr.hbm [resolvable:$true] %s236_s18 }
  0x11   : > { %p1668_p9 = pneg %p2022_p8  ;;  %s2278_s20 = smov 4  }
  0x12   : > { %s1935_s21 = smov [#allocation7]   ;;  %s253_s9 = sshll.u32 %s2274_s5, 4  ;;  %s254_s9 = int_to_ptr.hbm [resolvable:$true] %s253_s9 }
  0x13   : > { %p2030_p10 = pnand %p1668_p9, %p46_p1  ;;  %s238_s22 = sshll.u32 %s1935_s21, 4  ;;  %s239_s22 = int_to_ptr.vmem [resolvable:$true] %s238_s22 }
  0x14   : > { %s219_s11 = sshll.u32 %s2282_s1, 4  ;;  %s1936_s10 = smov [#allocation8]   ;;  %s220_s11 = int_to_ptr.hbm [resolvable:$true] %s219_s11 }
  0x15   : > { %1671 = dma.hbm_to_vmem [thread:$0]  (!%p2030_p10), %s220_s11, 3072, %s222_s14, [#allocation6], %s2277_s19, %s2277_s19, %s2278_s20  }
  0x16   : > { %1674 = dma.hbm_to_vmem [thread:$0]  (!%p2030_p10), %s237_s18, 3072, %s239_s22, [#allocation6], %s2277_s19, %s2277_s19, %s2278_s20  }
  0x17   : > { %s255_s11 = sshll.u32 %s1936_s10, 4  ;;  %s1937_s13 = smov 128   ;;  %s256_s11 = int_to_ptr.vmem [resolvable:$true] %s255_s11 }
  0x18   : > { %s1938_s14 = smov 8   ;;  %s2054_s16 = sadd.s32 1, %s1930_s27  }
  0x19   : > { %1677 = dma.hbm_to_vmem [thread:$0]  (!%p2030_p10), %s254_s9, 2048, %s256_s11, [#allocation9], %s1937_s13, %s1937_s13, %s1938_s14  }
  0x1a   : > { %s29_s17 = ssub.s32 %s1930_s27, %s2054_s16  ;;  %s32_s21 = sadd.s32 1, %s1926_s26 }
  0x1b   : > { %p30_p12 = scmp.eq.s32.totalorder %s29_s17, 0  ;;  %p39_p13 = scmp.ne.s32.totalorder %s1926_s26, %s1922_s25 }
  0x1c   : > { %p40_p0 = scmp.eq.s32.totalorder %s1930_s27, 0  ;;  %p1689_p5 = scmp.lt.s32.totalorder %s1930_s27, 2 }
  0x1d   : > { %s2063_s23 = scalar_select %p30_p12, %s1926_s26, %s32_s21  }
  0x1e   : > { %p2067_p3 = por %p195_p2, %p39_p13  ;;  %s272_s22 = sand.u32 1, %s1926_s26  }
  0x1f   : > { %s1591_s29 = sshll.u32 %s1930_s27, 5  ;;  %p41_p7 = por %p40_p0, %p39_p13 }
  0x20   : > { %s1367_s15 = sshll.u32 %s272_s22, 5  ;;  %s282_s11 = scalar_lea.hbm %s2269_s0, %s1591_s29 }
  0x21   : > { %s283_s13 = sshll.u32 %s282_s11, 4  ;;  %s276_s14 = scalar_lea.vmem [#allocation2], %s1367_s15  ;;  %s284_s13 = int_to_ptr.hbm [resolvable:$true] %s283_s13 }
  0x22   : > { %s285_s17 = sshll.u32 %s276_s14, 4  ;;  %p2077_p9 = pnand %p1689_p5, %p41_p7  ;;  %s286_s17 = int_to_ptr.vmem [resolvable:$true] %s285_s17 }
  0x23   : > { %s273_s19 = scalar_lea.sflag [#allocation3], %s272_s22  ;;  %s1826_s20 = sshra.s32 %s284_s13, 4  ;;  %s1827_s20 = int_to_ptr.hbm [resolvable:$true] %s1826_s20 }
  0x24   : > { %s1828_s1 = scalar_lea.hbm %s1827_s20, 32  ;;  %p1830_p10 = pneg %p2077_p9 }
  0x25   : > { %p1829_p2 = scmp.ne.s32.totalorder %s1827_s20, %s1828_s1  ;;  %s1833_s15 = scalar_lea.hbm %s2269_s0, 64 }
  0x26   : > { %p1834_p0 = scmp.lt.s32.totalorder %s1827_s20, %s2269_s0  ;;  %p1835_p5 = scmp.lt.s32.totalorder %s1833_s15, %s1828_s1 }
  0x27   : > { %p1831_p12 = pnand %p1830_p10, %p1829_p2 }
  0x28   : > { %p1836_p7 = por %p1835_p5, %p1834_p0 }
  0x29   : > { %p1832_p13 = pneg %p1831_p12 }
  0x2b   : > { %p1837_p11 = pnand %p1836_p7, %p1832_p13 }
  0x2d   : > { %1840 = shalt.err (!%p1837_p11)
}
  0x2e   : > { %s2287_s22 = smov 4   ;;  %s2288_s14 = smov 64  }
  0x2f   : > { %1681 = dma.hbm_to_vmem [thread:$0]  (!%p2077_p9), %s284_s13, 512, %s286_s17, %s273_s19, %s2288_s14, %s2288_s14, %s2287_s22  }
  0x30   : > { %297 = sbr.rel (%p2022_p8) target bundleno = 657 (0x291), region = 48  ;;  %s2097_s29 = sand.u32 (!%p2022_p8), 1, %s1922_s25  }
  0x31   : > { %s1372_s20 = sshll.u32 (!%p2022_p8), %s2097_s29, 5  ;;  %s300_s1 = scalar_lea.sflag (!%p2022_p8), [#allocation3], %s2097_s29 }
  0x32   : > { %s2101_s9 = scalar_lea.vmem (!%p2022_p8), [#allocation2], %s1372_s20 }
  0x35   : > { %1901 = dma.done.wait (%p2009_p4), %s300_s1, 512  }
  0x36   : > { %1903 = vsyncadd (%p2009_p4), %s300_s1, 4294966784 }
  0x37   : > { %1905 = dma.done.wait (%p46_p1), [#allocation6], 6144  }
  0x38   : > { %1907 = vsyncadd (%p46_p1), [#allocation6], 4294961152 }
  0x39   : > { %1909 = dma.done.wait (%p46_p1), [#allocation9], 2048  }
  0x3a   : > { %1911 = vsyncadd (%p46_p1), [#allocation9], 4294965248  ;;  %v1603_v0 = vld [vmem:[#allocation5 + $0x38] sm:$0xff]  ;;  %v1602_v2 = vld [vmem:[#allocation5 + $0x30] sm:$0xff]  ;;  %vm493_vm0 = vcmask 1044480   ;;  %vm471_vm1 = vcmask 1046528  }
  0x3b   : > { %v1611_v1 = vld [vmem:[#allocation5 + $0x78] sm:$0xff]  ;;  %1644 = vmatpush.bf16.msra.mxu2 %v1603_v0  ;;  %v1610_v3 = vld [vmem:[#allocation5 + $0x70] sm:$0xff]  ;;  %650 = vmatpush.bf16.msra.mxu0 %v1603_v0  ;;  %v1601_v4 = vld [vmem:[#allocation5 + $0x28] sm:$0xff]  ;;  %vm483_vm2 = vcmask 1045504   ;;  %vm881_vm8 = vcmask 1042432   ;;  %vm907_vm10 = vcmask 1043456  }
  0x3c   : > { %678 = vmatpush.bf16.msra.mxu1 %v1611_v1  ;;  %v1609_v5 = vld [vmem:[#allocation5 + $0x68] sm:$0xff]  ;;  %v1600_v6 = vld [vmem:[#allocation5 + $0x20] sm:$0xff]  ;;  %v1599_v9 = vld [vmem:[#allocation5 + $0x18] sm:$0xff]  ;;  %vm920_vm12 = vcmask 1041408   ;;  %vm830_vm13 = vsmask.f32 7424 }
  0x3d   : > { %v1608_v7 = vld [vmem:[#allocation5 + $0x60] sm:$0xff]  ;;  %v1593_v8 = vld [vmem:[%s2101_s9 + $0x8] sm:$0xff]  ;;  %v1607_v10 = vld [vmem:[#allocation5 + $0x58] sm:$0xff]  ;;  %s1376_s17 = sshll.u32 %s2097_s29, 2  ;;  %s1587_s21 = sshll.u32 %s2000_s28, 2 }
  0x3e   : > { %v2117_v11 = vld [vmem:[%s2101_s9] sm:$0xff]  ;;  %v429_v12 = vshll.u32 %v1593_v8, 16  ;;  %v1598_v13 = vld [vmem:[#allocation5 + $0x10] sm:$0xff]  ;;  %v427_v16 = vshrl.u32 %v1593_v8, 16  ;;  %v1597_v18 = vld [vmem:[#allocation5 + $0x8] sm:$0xff]  ;;  %v433_v32 = vrot.slane %v1593_v8, 1  ;;  %s1257_s11 = scalar_lea.hbm %s2276_s7, %s1587_s21 }
  0x3f   : > { %1645 = vmatpush.bf16.msra.mxu2 %v1602_v2  ;;  %651 = vmatpush.bf16.msra.mxu0 %v1602_v2  ;;  %v1606_v14 = vld [vmem:[#allocation5 + $0x50] sm:$0xff]  ;;  %v416_v15 = vshll.u32 %v2117_v11, 16  ;;  %v1605_v19 = vld [vmem:[#allocation5 + $0x48] sm:$0xff]  ;;  %v2124_v21 = vld [vmem:[%s2101_s9 + $0x18] sm:$0xff]  ;;  %v414_v22 = vshrl.u32 %v2117_v11, 16  ;;  %v420_v55 = vrot.slane %v2117_v11, 1 }
  0x40   : > { %679 = vmatpush.bf16.msra.mxu1 %v1610_v3  ;;  %v431_v17 = vrot.slane %v429_v12, 1  ;;  %v2121_v20 = vld [vmem:[%s2101_s9 + $0x10] sm:$0xff]  ;;  %v1596_v25 = vld [vmem:[#allocation5] sm:$0xff]  ;;  %v465_v28 = vrot.slane %v2124_v21, 3  ;;  %v1619_v31 = vld [vmem:[#allocation5 + $0xb8] sm:$0xff]  ;;  %v473_v37 = vsel %vm471_vm1, %v2117_v11, %v433_v32  ;;  %v455_v46 = vshll.u32 %v2124_v21, 16 }
  0x41   : > { %v418_v23 = vrot.slane %v416_v15, 1  ;;  %v1604_v26 = vld [vmem:[#allocation5 + $0x40] sm:$0xff]  ;;  %v462_v27 = vrot.slane %v2121_v20, 2  ;;  %v442_v35 = vshll.u32 %v2121_v20, 16  ;;  %v1618_v36 = vld [vmem:[#allocation5 + $0xb0] sm:$0xff]  ;;  %v440_v38 = vshrl.u32 %v2121_v20, 16 }
  0x42   : > { %v432_v24 = vor.u32 %v431_v17, %v427_v16  ;;  %v1617_v40 = vld [vmem:[#allocation5 + $0xa8] sm:$0xff]  ;;  %v1616_v42 = vld [vmem:[#allocation5 + $0xa0] sm:$0xff]  ;;  %v1615_v44 = vld [vmem:[#allocation5 + $0x98] sm:$0xff]  ;;  %v453_v49 = vshrl.u32 %v2124_v21, 16  ;;  %v457_v50 = vrot.slane %v455_v46, 1  ;;  %v461_v56 = vrot.slane %v433_v32, 1 }
  0x43   : > { %1646 = vmatpush.bf16.msra.mxu2 %v1601_v4  ;;  %652 = vmatpush.bf16.msra.mxu0 %v1601_v4  ;;  %v419_v29 = vor.u32 %v418_v23, %v414_v22  ;;  %v495_v33 = vsel %vm493_vm0, %v462_v27, %v465_v28  ;;  %v444_v39 = vrot.slane %v442_v35, 1  ;;  %v1614_v47 = vld [vmem:[#allocation5 + $0x90] sm:$0xff]  ;;  %v485_v48 = vsel %vm483_vm2, %v433_v32, %v462_v27  ;;  %v1613_v51 = vld [vmem:[#allocation5 + $0x88] sm:$0xff]  ;;  %v1612_v53 = vld [vmem:[#allocation5 + $0x80] sm:$0xff]  ;;  %s349_s20 = scalar_lea.vmem [#allocation10], %s1376_s17  ;;  %s1261_s9 = sshll.u32 %s1257_s11, 4  ;;  %s1262_s9 = int_to_ptr.hbm [resolvable:$true] %s1261_s9 }
  0x44   : > { %680 = vmatpush.bf16.msra.mxu1 %v1609_v5  ;;  %v460_v30 = vrot.slane %v432_v24, 1  ;;  %v458_v52 = vor.u32 %v457_v50, %v453_v49  ;;  %v481_v58 = vsel %vm471_vm1, %v420_v55, %v461_v56  ;;  %v446_v59 = vrot.slane %v2121_v20, 1  ;;  %v1627_v2 = vld [vmem:[#allocation7 + $0x38] sm:$0xff]  ;;  %v1626_v5 = vld [vmem:[#allocation7 + $0x30] sm:$0xff]  ;;  %v1620_v23 = vld [vmem:[#allocation7] sm:$0xff]  ;;  %s1259_s1 = sshll.u32 %s349_s20, 4  ;;  %s1260_s1 = int_to_ptr.vmem [resolvable:$true] %s1259_s1 }
  0x45   : > { %v445_v41 = vor.u32 %v444_v39, %v440_v38  ;;  %v459_v62 = vrot.slane %v2124_v21, 1  ;;  %1077 = vmatpush.bf16.msra.mxu3 %v1627_v2  ;;  %v1643_v8 = vld [vmem:[#allocation7 + $0xb8] sm:$0xff]  ;;  %v1642_v11 = vld [vmem:[#allocation7 + $0xb0] sm:$0xff]  ;;  %v1637_v27 = vld [vmem:[#allocation7 + $0x88] sm:$0xff]  ;;  %s1247_s30 = scalar_lea.sflag [#allocation4], %s2097_s29  ;;  %s1870_s12 = sshra.s32 %s1262_s9, 4  ;;  %s1871_s12 = int_to_ptr.hbm [resolvable:$true] %s1870_s12 }
  0x46   : > { %v477_v34 = vsel %vm471_vm1, %v419_v29, %v460_v30  ;;  %v466_v54 = vrot.slane %v458_v52, 3  ;;  %v464_v60 = vrot.slane %v446_v59, 2  ;;  %v1623_v12 = vld [vmem:[#allocation7 + $0x18] sm:$0xff]  ;;  %v1622_v17 = vld [vmem:[#allocation7 + $0x10] sm:$0xff]  ;;  %v1633_v55 = vld [vmem:[#allocation7 + $0x68] sm:$0xff]  ;;  %s1872_s28 = scalar_lea.hbm %s1871_s12, 4  ;;  %p1877_p11 = scmp.lt.s32.totalorder %s1871_s12, %s2276_s7 }
  0x47   : > { %1647 = vmatpush.bf16.msra.mxu2 %v1600_v6  ;;  %653 = vmatpush.bf16.msra.mxu0 %v1600_v6  ;;  %v463_v43 = vrot.slane %v445_v41, 2  ;;  %v467_v63 = vrot.slane %v459_v62, 3  ;;  %v1625_v6 = vld [vmem:[#allocation7 + $0x28] sm:$0xff]  ;;  %v1639_v21 = vld [vmem:[#allocation7 + $0x98] sm:$0xff]  ;;  %v1634_v41 = vld [vmem:[#allocation7 + $0x70] sm:$0xff]  ;;  %p1873_p1 = scmp.ne.s32.totalorder %s1871_s12, %s1872_s28  ;;  %s1876_s21 = scalar_lea.hbm %s2276_s7, 8 }
  0x48   : > { %681 = vmatpush.bf16.msra.mxu1 %v1608_v7  ;;  %v491_v61 = vsel %vm483_vm2, %v461_v56, %v464_v60  ;;  %v1632_v2 = vld [vmem:[#allocation7 + $0x60] sm:$0xff]  ;;  %p1878_p9 = scmp.lt.s32.totalorder %s1876_s21, %s1872_s28 }
  0x49   : > { %v488_v45 = vsel %vm483_vm2, %v460_v30, %v463_v43  ;;  %v498_v57 = vsel %vm493_vm0, %v463_v43, %v466_v54  ;;  %v501_v0 = vsel %vm493_vm0, %v464_v60, %v467_v63  ;;  %1078 = vmatpush.bf16.msra.mxu3 %v1626_v5  ;;  %v1635_v30 = vld [vmem:[#allocation7 + $0x78] sm:$0xff]  ;;  %vm1175_vm0 = vcmask 1047556   ;;  %p1874_p4 = pnand %p1873_p1, %p2067_p3 }
  0x4a   : > { %p1879_p2 = por %p1878_p9, %p1877_p11 }
  0x4b   : > { %1648 = vmatpush.bf16.msra.mxu2 %v1599_v9  ;;  %654 = vmatpush.bf16.msra.mxu0 %v1599_v9  ;;  %p1875_p8 = pneg %p1874_p4 }
  0x4c   : > { %682 = vmatpush.bf16.msra.mxu1 %v1607_v10  ;;  %v1624_v10 = vld [vmem:[#allocation7 + $0x20] sm:$0xff] }
  0x4d   : > { %1079 = vmatpush.bf16.msra.mxu3 %v1625_v6  ;;  %p1880_p10 = pnand %p1879_p2, %p1875_p8 }
  0x4f   : > { %1649 = vmatpush.bf16.msra.mxu2 %v1598_v13  ;;  %655 = vmatpush.bf16.msra.mxu0 %v1598_v13 }
  0x50   : > { %683 = vmatpush.bf16.msra.mxu1 %v1606_v14  ;;  %v1641_v14 = vld [vmem:[#allocation7 + $0xa8] sm:$0xff] }
  0x51   : > { %1080 = vmatpush.bf16.msra.mxu3 %v1624_v10 }
  0x53   : > { %1650 = vmatpush.bf16.msra.mxu2 %v1597_v18  ;;  %656 = vmatpush.bf16.msra.mxu0 %v1597_v18  ;;  %v1640_v18 = vld [vmem:[#allocation7 + $0xa0] sm:$0xff] }
  0x54   : > { %684 = vmatpush.bf16.msra.mxu1 %v1605_v19  ;;  %v1621_v19 = vld [vmem:[#allocation7 + $0x8] sm:$0xff] }
  0x55   : > { %1081 = vmatpush.bf16.msra.mxu3 %v1623_v12 }
  0x57   : > { %1651 = vmatpush.bf16.msra.mxu2 %v1596_v25  ;;  %657 = vmatpush.bf16.msra.mxu0 %v1596_v25  ;;  %v1638_v25 = vld [vmem:[#allocation7 + $0x90] sm:$0xff] }
  0x58   : > { %685 = vmatpush.bf16.msra.mxu1 %v1604_v26 }
  0x59   : > { %1082 = vmatpush.bf16.msra.mxu3 %v1622_v17  ;;  %v1630_v17 = vld [vmem:[#allocation7 + $0x50] sm:$0xff] }
  0x5a   : > { %668 = vmatmul.bf16.vlgmr.msra.gmra.mxu2 %v495_v33  ;;  %658 = vmatmul.bf16.vlgmr.msra.gmra.mxu0 %v473_v37  ;;  %v1636_v33 = vld [vmem:[#allocation7 + $0x80] sm:$0xff] }
  0x5b   : > { %706 = vmatpush.bf16.msrb.mxu2 %v1619_v31  ;;  %686 = vmatmul.bf16.vlgmr.msra.gmra.mxu1 %v477_v34 }
  0x5c   : > { %1125 = vmatpush.bf16.msrb.mxu0 %v1643_v8  ;;  %v1631_v8 = vld [vmem:[#allocation7 + $0x58] sm:$0xff] }
  0x5d   : > { %1083 = vmatpush.bf16.msra.mxu3 %v1621_v19 }
  0x5f   : > { %707 = vmatpush.bf16.msrb.mxu2 %v1618_v36 }
  0x60   : > { %1126 = vmatpush.bf16.msrb.mxu0 %v1642_v11 }
  0x61   : > { %1084 = vmatpush.bf16.msra.mxu3 %v1620_v23  ;;  %v1629_v23 = vld [vmem:[#allocation7 + $0x48] sm:$0xff] }
  0x63   : > { %708 = vmatpush.bf16.msrb.mxu2 %v1617_v40 }
  0x64   : > { %1127 = vmatpush.bf16.msrb.mxu0 %v1641_v14 }
  0x65   : > { %1101 = vmatpush.bf16.msrb.mxu3 %v1635_v30 }
  0x67   : > { %709 = vmatpush.bf16.msrb.mxu2 %v1616_v42 }
  0x68   : > { %1128 = vmatpush.bf16.msrb.mxu0 %v1640_v18 }
  0x69   : > { %1102 = vmatpush.bf16.msrb.mxu3 %v1634_v41 }
  0x6a   : > { %673 = vmatmul.bf16.gmra.mxu2 %v465_v28  ;;  %663 = vmatmul.bf16.gmra.mxu0 %v485_v48  ;;  %v2157_v28 = vld [vmem:[%s2271_s2] ss:$0 sm:$0xff] }
  0x6b   : > { %710 = vmatpush.bf16.msrb.mxu2 %v1615_v44  ;;  %691 = vmatmul.bf16.gmra.mxu1 %v488_v45 }
  0x6c   : > { %1129 = vmatpush.bf16.msrb.mxu0 %v1639_v21 }
  0x6d   : > { %1103 = vmatpush.bf16.msrb.mxu3 %v1633_v55 }
  0x6f   : > { %711 = vmatpush.bf16.msrb.mxu2 %v1614_v47 }
  0x70   : > { %1130 = vmatpush.bf16.msrb.mxu0 %v1638_v25 }
  0x71   : > { %1104 = vmatpush.bf16.msrb.mxu3 %v1632_v2 }
  0x73   : > { %712 = vmatpush.bf16.msrb.mxu2 %v1613_v51 }
  0x74   : > { %1131 = vmatpush.bf16.msrb.mxu0 %v1637_v27 }
  0x75   : > { %1105 = vmatpush.bf16.msrb.mxu3 %v1631_v8 }
  0x77   : > { %713 = vmatpush.bf16.msrb.mxu2 %v1612_v53 }
  0x78   : > { %1132 = vmatpush.bf16.msrb.mxu0 %v1636_v33 }
  0x79   : > { %1106 = vmatpush.bf16.msrb.mxu3 %v1630_v17 }
  0x7a   : > { %714 = vmatmul.bf16.vlgmr.msrb.gmra.mxu2 %v481_v58 }
  0x7b   : > { %696 = vmatmul.bf16.gmra.mxu1 %v498_v57 }
  0x7d   : > { %1107 = vmatpush.bf16.msrb.mxu3 %v1629_v23 }
  0x8a   : > { %719 = vmatmul.bf16.gmra.mxu2 %v491_v61 }
  0x8b   : > { %701 = vmatmul.bf16.gmra.mxu1 %v466_v54 }
  0x9a   : > { %724 = vmatmul.bf16.gmra.mxu2 %v501_v0 }
  0xaa   : > { %729 = vmatmul.bf16.gmra.mxu2 %v467_v63 }
  0xd7   : > { %v659_v16 = vpop.f32.mrf.mxu0 }
  0xd8   : > { %v687_v1 = vpop.f32.mrf.mxu1  ;;  %v660_v31 = vadd.f32 %v2157_v28, %v659_v16 }
  0xda   : > { %v688_v35 = vadd.f32 %v687_v1, %v660_v31 }
  0xdd   : > { %v2146_v3 = vpop.f32.mrf.mxu2 }
  0xdf   : > { %v661_v24 = vpop.f32.mrf.mxu0 }
  0xe0   : > { %v689_v4 = vpop.f32.mrf.mxu1  ;;  %v662_v32 = vadd.f32 %v2157_v28, %v661_v24 }
  0xe2   : > { %v690_v36 = vadd.f32 %v689_v4, %v662_v32 }
  0xe5   : > { %v2148_v7 = vpop.f32.mrf.mxu2 }
  0xe7   : > { %v664_v34 = vpop.f32.mrf.mxu0 }
  0xe8   : > { %v692_v9 = vpop.f32.mrf.mxu1  ;;  %v665_v38 = vadd.f32 %v2157_v28, %v664_v34  ;;  %v1628_v34 = vld [vmem:[#allocation7 + $0x40] sm:$0xff] }
  0xe9   : > { %1108 = vmatpush.bf16.msrb.mxu3 %v1628_v34  ;;  %v1220_v34 = vld [vmem:[#allocation8 + $0x78] sm:$0xff] }
  0xea   : > { %v693_v44 = vadd.f32 %v692_v9, %v665_v38  ;;  %v670_v9 = vadd.f32 %v2157_v28, %v2146_v3  ;;  %v672_v3 = vadd.f32 %v2157_v28, %v2148_v7  ;;  %1225 = vmatpush.msrb.mxu1 %v1220_v34 }
  0xed   : > { %v2150_v13 = vpop.f32.mrf.mxu2 }
  0xef   : > { %v666_v46 = vpop.f32.mrf.mxu0 }
  0xf0   : > { %v694_v15 = vpop.f32.mrf.mxu1  ;;  %v667_v52 = vadd.f32 %v2157_v28, %v666_v46 }
  0xf2   : > { %v695_v59 = vadd.f32 %v694_v15, %v667_v52 }
  0xf5   : > { %v676_v20 = vpop.f32.mrf.mxu2 }
  0xf8   : > { %v2152_v22 = vpop.f32.mrf.mxu1 }
  0xf9   : > { %v698_v14 = vadd.f32 %v2152_v22, %v670_v9 }
  0xfd   : > { %v715_v26 = vpop.f32.mrf.mxu2 }
  0xfe   : > { %v716_v42 = vadd.f32 %v715_v26, %v688_v35 }
 0x100   : > { %v2159_v29 = vpop.f32.mrf.mxu1  ;;  %v741_v45 = vmul.f32 0.22916667, %v716_v42  ;;  %vm734_vm4 = vcmp.ge.f32.partialorder %v716_v42, 0.0 }
 0x101   : > { %v700_v30 = vadd.f32 %v2159_v29, %v672_v3  ;;  %v675_v29 = vadd.f32 %v2157_v28, %v2150_v13 }
 0x102   : > { %v748_v51 = vsel %vm734_vm4, %v716_v42, %v741_v45 }
 0x103   : > { %v755_v57 = vpack.c.bf16 %v748_v51, %v748_v51 }
 0x105   : > { %v717_v37 = vpop.f32.mrf.mxu2  ;;  %v813_v0 = vunpack.c.l.b16 %v755_v57 }
 0x106   : > { %v718_v39 = vadd.f32 %v717_v37, %v690_v36 }
 0x108   : > { %v2164_v40 = vpop.f32.mrf.mxu1  ;;  %v742_v43 = vmul.f32 0.22916667, %v718_v39  ;;  %vm735_vm3 = vcmp.ge.f32.partialorder %v718_v39, 0.0 }
 0x10a   : > { %v749_v48 = vsel %vm735_vm3, %v718_v39, %v742_v43 }
 0x10b   : > { %v756_v54 = vpack.c.bf16 %v749_v48, %v749_v48 }
 0x10d   : > { %v720_v47 = vpop.f32.mrf.mxu2  ;;  %v814_v60 = vunpack.c.l.b16 %v756_v54 }
 0x10e   : > { %v721_v49 = vadd.f32 %v720_v47, %v693_v44  ;;  %v703_v44 = vadd.f32 %v2164_v40, %v675_v29  ;;  %v1217_v29 = vld [vmem:[#allocation8 + $0x60] sm:$0xff] }
 0x10f   : > { %v2169_v5 = vpack.c.b16 %v814_v60, %v813_v0 }
 0x110   : > { %v704_v50 = vpop.f32.mrf.mxu1  ;;  %vm736_vm5 = vcmp.ge.f32.partialorder %v721_v49, 0.0  ;;  %v743_v53 = vmul.f32 0.22916667, %v721_v49 }
 0x111   : > { %v823_v22 = vrot.slane %v2169_v5, 1  ;;  %v819_v0 = vshll.u32 %v2169_v5, 16  ;;  %v817_v9 = vshrl.u32 %v2169_v5, 16 }
 0x112   : > { %v750_v56 = vsel %vm736_vm5, %v721_v49, %v743_v53 }
 0x113   : > { %v757_v58 = vpack.c.bf16 %v750_v56, %v750_v56 }
 0x115   : > { %v826_v61 = vunpack.c.l.b16 %v757_v58  ;;  %v722_v62 = vpop.f32.mrf.mxu2 }
 0x116   : > { %v723_v63 = vadd.f32 %v722_v62, %v695_v59 }
 0x117   : > { %v2167_v1 = vpack.c.b16 %v826_v61, %v814_v60 }
 0x118   : > { %vm737_vm6 = vcmp.ge.f32.partialorder %v723_v63, 0.0  ;;  %v744_v4 = vmul.f32 0.22916667, %v723_v63 }
 0x119   : > { %v882_v6 = vrot.slane %v2167_v1, 5  ;;  %v834_v58 = vshll.u32 %v2167_v1, 16  ;;  %v832_v62 = vshrl.u32 %v2167_v1, 16 }
 0x11a   : > { %v751_v10 = vsel %vm737_vm6, %v723_v63, %v744_v4 }
 0x11b   : > { %v758_v11 = vpack.c.bf16 %v751_v10, %v751_v10  ;;  %v897_v12 = vsel %vm483_vm2, %v2169_v5, %v882_v6 }
 0x11c   : > { %1085 = vmatmul.bf16.vlgmr.msra.gmra.mxu3 %v897_v12 }
 0x11d   : > { %v827_v15 = vunpack.c.l.b16 %v758_v11  ;;  %v725_v16 = vpop.f32.mrf.mxu2 }
 0x11e   : > { %v726_v18 = vadd.f32 %v725_v16, %v698_v14 }
 0x11f   : > { %v846_v19 = vpack.c.b16 %v827_v15, %v826_v61  ;;  %v2179_v24 = vpack.c.b16 %v827_v15, %v827_v15  ;;  %v836_v61 = vrot.slane %v834_v58, 1  ;;  %v1210_v58 = vld [vmem:[#allocation8 + $0x28] sm:$0xff] }
 0x120   : > { %vm738_vm7 = vcmp.ge.f32.partialorder %v726_v18, 0.0  ;;  %v745_v20 = vmul.f32 0.22916667, %v726_v18 }
 0x121   : > { %v847_v21 = vrot.slane %v846_v19, 5  ;;  %v885_v36 = vrot.slane %v2179_v24, 5  ;;  %v839_v60 = vshll.u32 %v2179_v24, 16  ;;  %v837_v2 = vor.u32 %v836_v61, %v832_v62 }
 0x122   : > { %v752_v25 = vsel %vm738_vm7, %v726_v18, %v745_v20  ;;  %v843_v16 = vshrl.u32 %v2179_v24, 16 }
 0x123   : > { %v759_v26 = vpack.c.bf16 %v752_v25, %v752_v25  ;;  %v884_v27 = vrot.slane %v847_v21, 5  ;;  %v886_v41 = vsel %vm881_vm8, %v882_v6, %v885_v36  ;;  %v841_v63 = vrot.slane %v839_v60, 1  ;;  %v1219_v36 = vld [vmem:[#allocation8 + $0x70] sm:$0xff] }
 0x124   : > { %v821_v6 = vrot.slane %v819_v0, 1  ;;  %1226 = vmatpush.msrb.mxu1 %v1219_v36 }
 0x125   : > { %v849_v31 = vunpack.c.l.b16 %v759_v26  ;;  %v727_v32 = vpop.f32.mrf.mxu2  ;;  %v905_v33 = vsel %vm483_vm2, %v823_v22, %v884_v27  ;;  %v842_v4 = vsel %vm830_vm13, %v837_v2, %v841_v63  ;;  %v845_v19 = vor.u32 %v843_v16, %v841_v63 }
 0x126   : > { %v728_v35 = vadd.f32 %v727_v32, %v700_v30  ;;  %1133 = vmatmul.bf16.vlgmr.msrb.gmra.mxu0 %v905_v33  ;;  %v883_v10 = vrot.slane %v842_v4, 5  ;;  %v822_v11 = vor.u32 %v821_v6, %v817_v9  ;;  %v1208_v9 = vld [vmem:[#allocation8 + $0x18] sm:$0xff] }
 0x127   : > { %v850_v7 = vpack.c.b16 %v849_v31, %v827_v15  ;;  %v887_v23 = vrot.slane %v845_v19, 5  ;;  %v1206_v19 = vld [vmem:[#allocation8 + $0x8] sm:$0xff] }
 0x128   : > { %vm739_vm9 = vcmp.ge.f32.partialorder %v728_v35, 0.0  ;;  %v746_v37 = vmul.f32 0.22916667, %v728_v35  ;;  %v901_v14 = vsel %vm483_vm2, %v822_v11, %v883_v10  ;;  %vm1200_vm2 = vcmask 1040384  }
 0x129   : > { %v890_v38 = vrot.slane %v850_v7, 6  ;;  %v867_v50 = vrot.slane %v850_v7, 1  ;;  %v857_v12 = vshll.u32 %v850_v7, 16  ;;  %v855_v17 = vshrl.u32 %v850_v7, 16  ;;  %v1218_v7 = vld [vmem:[#allocation8 + $0x68] sm:$0xff] }
 0x12a   : > { %v753_v39 = vsel %vm739_vm9, %v728_v35, %v746_v37  ;;  %v888_v5 = vsel %vm881_vm8, %v883_v10, %v887_v23  ;;  %1227 = vmatpush.msrb.mxu1 %v1218_v7  ;;  %v1205_v23 = vld [vmem:[#allocation8] sm:$0xff] }
 0x12b   : > { %v760_v42 = vpack.c.bf16 %v753_v39, %v753_v39  ;;  %v910_v43 = vsel %vm907_vm10, %v886_v41, %v890_v38  ;;  %v859_v1 = vrot.slane %v857_v12, 1  ;;  %v1216_v39 = vld [vmem:[#allocation8 + $0x58] sm:$0xff] }
 0x12c   : > { %1090 = vmatmul.bf16.gmra.mxu3 %v910_v43  ;;  %1228 = vmatpush.msrb.mxu1 %v1217_v29  ;;  %v2215_v43 = vld [vmem:[%s2273_s4] ss:$0 sm:$0xff] }
 0x12d   : > { %v852_v45 = vunpack.c.l.b16 %v760_v42  ;;  %v730_v46 = vpop.f32.mrf.mxu2  ;;  %v860_v20 = vor.u32 %v859_v1, %v855_v17 }
 0x12e   : > { %v731_v47 = vadd.f32 %v730_v46, %v703_v44  ;;  %1229 = vmatpush.msrb.mxu1 %v1216_v39  ;;  %v1214_v46 = vld [vmem:[#allocation8 + $0x48] sm:$0xff] }
 0x12f   : > { %v853_v48 = vpack.c.b16 %v852_v45, %v852_v45 }
 0x130   : > { %vm740_vm11 = vcmp.ge.f32.partialorder %v731_v47, 0.0  ;;  %v747_v49 = vmul.f32 0.22916667, %v731_v47 }
 0x131   : > { %v868_v51 = vrot.slane %v853_v48, 1  ;;  %v862_v15 = vshll.u32 %v853_v48, 16 }
 0x132   : > { %v754_v52 = vsel %vm740_vm11, %v731_v47, %v747_v49  ;;  %v1213_v49 = vld [vmem:[#allocation8 + $0x40] sm:$0xff] }
 0x133   : > { %v761_v53 = vpack.c.bf16 %v754_v52, %v754_v52  ;;  %v869_v13 = vsel %vm471_vm1, %v867_v50, %v868_v51  ;;  %v864_v18 = vrot.slane %v862_v15, 1  ;;  %v1212_v51 = vld [vmem:[#allocation8 + $0x38] sm:$0xff] }
 0x134   : > { %v892_v28 = vrot.slane %v869_v13, 6 }
 0x135   : > { %v871_v54 = vunpack.c.l.b16 %v761_v53  ;;  %v732_v55 = vpop.f32.mrf.mxu2  ;;  %v865_v21 = vsel %vm830_vm13, %v860_v20, %v864_v18 }
 0x136   : > { %v918_v56 = vsel %vm907_vm10, %v884_v27, %v892_v28  ;;  %v891_v3 = vrot.slane %v865_v21, 6 }
 0x137   : > { %v872_v57 = vpack.c.b16 %v871_v54, %v852_v45  ;;  %1138 = vmatmul.bf16.gmra.mxu0 %v918_v56  ;;  %v1215_v45 = vld [vmem:[#allocation8 + $0x50] sm:$0xff] }
 0x138   : > { %v914_v25 = vsel %vm907_vm10, %v888_v5, %v891_v3  ;;  %1230 = vmatpush.msrb.mxu1 %v1215_v45 }
 0x139   : > { %v893_v40 = vrot.slane %v872_v57, 7  ;;  %v928_v8 = vsel %vm920_vm12, %v892_v28, %v872_v57  ;;  %v876_v26 = vshll.u32 %v872_v57, 16  ;;  %v874_v27 = vshrl.u32 %v872_v57, 16 }
 0x13a   : > { %1231 = vmatpush.msrb.mxu1 %v1214_v46 }
 0x13b   : > { %v922_v59 = vsel %vm920_vm12, %v890_v38, %v893_v40  ;;  %v878_v22 = vrot.slane %v876_v26, 1  ;;  %v1211_v40 = vld [vmem:[#allocation8 + $0x30] sm:$0xff] }
 0x13c   : > { %1095 = vmatmul.bf16.gmra.mxu3 %v922_v59  ;;  %1232 = vmatpush.msrb.mxu1 %v1213_v49 }
 0x13d   : > { %v879_v30 = vor.u32 %v878_v22, %v874_v27 }
 0x13e   : > { %1233 = vmatpush.msrb.mxu1 %v1212_v51 }
 0x13f   : > { %v894_v31 = vrot.slane %v879_v30, 7 }
 0x140   : > { %1234 = vmatpush.msrb.mxu1 %v1211_v40 }
 0x141   : > { %v925_v24 = vsel %vm920_vm12, %v891_v3, %v894_v31 }
 0x142   : > { %1235 = vmatpush.msrb.mxu1 %v1210_v58 }
 0x147   : > { %1143 = vmatmul.bf16.gmra.mxu0 %v928_v8  ;;  %v1209_v8 = vld [vmem:[#allocation8 + $0x20] sm:$0xff] }
 0x148   : > { %1236 = vmatpush.msrb.mxu1 %v1209_v8 }
 0x14a   : > { %1237 = vmatpush.msrb.mxu1 %v1208_v9 }
 0x14c   : > { %1109 = vmatmul.bf16.vlgmr.msrb.gmra.mxu3 %v901_v14  ;;  %v1207_v14 = vld [vmem:[#allocation8 + $0x10] sm:$0xff] }
 0x14d   : > { %1238 = vmatpush.msrb.mxu1 %v1207_v14 }
 0x14f   : > { %1239 = vmatpush.msrb.mxu1 %v1206_v19 }
 0x151   : > { %1240 = vmatpush.msrb.mxu1 %v1205_v23 }
 0x15c   : > { %1114 = vmatmul.bf16.gmra.mxu3 %v914_v25 }
 0x16c   : > { %1119 = vmatmul.bf16.gmra.mxu3 %v925_v24 }
 0x19f   : > { %v1086_v32 = vpop.f32.mrf.mxu3 }
 0x1a0   : > { %v1087_v47 = vadd.f32 %v2215_v43, %v1086_v32 }
 0x1a3   : > { %v1134_v41 = vpop.f32.mrf.mxu0 }
 0x1a7   : > { %v1088_v33 = vpop.f32.mrf.mxu3 }
 0x1a8   : > { %v1089_v52 = vadd.f32 %v2215_v43, %v1088_v33 }
 0x1ab   : > { %v1136_v48 = vpop.f32.mrf.mxu0 }
 0x1af   : > { %v1091_v35 = vpop.f32.mrf.mxu3 }
 0x1b0   : > { %v1092_v59 = vadd.f32 %v2215_v43, %v1091_v35 }
 0x1b4   : > { %v1139_v55 = vpop.f32.mrf.mxu0 }
 0x1b7   : > { %v2206_v37 = vpop.f32.mrf.mxu3 }
 0x1b8   : > { %v1094_v20 = vadd.f32 %v2215_v43, %v2206_v37 }
 0x1bc   : > { %v1141_v12 = vpop.f32.mrf.mxu0 }
 0x1bf   : > { %v2208_v38 = vpop.f32.mrf.mxu3 }
 0x1c0   : > { %v1097_v22 = vadd.f32 %v2215_v43, %v2208_v38 }
 0x1c4   : > { %v1144_v27 = vpop.f32.mrf.mxu0 }
 0x1c7   : > { %v2210_v42 = vpop.f32.mrf.mxu3 }
 0x1cc   : > { %v1146_v49 = vpop.f32.mrf.mxu0 }
 0x1cf   : > { %v1110_v44 = vpop.f32.mrf.mxu3 }
 0x1d0   : > { %v1111_v50 = vadd.f32 %v1110_v44, %v1087_v47 }
 0x1d2   : > { %v1135_v53 = vadd.f32 %v1134_v41, %v1111_v50  ;;  %v1099_v41 = vadd.f32 %v2215_v43, %v2210_v42 }
 0x1d4   : > { %v1155_v56 = vmul.f32 0.22916667, %v1135_v53  ;;  %vm1149_vm14 = vcmp.ge.f32.partialorder %v1135_v53, 0.0 }
 0x1d6   : > { %v1161_v61 = vsel %vm1149_vm14, %v1135_v53, %v1155_v56 }
 0x1d7   : > { %v1112_v13 = vpop.f32.mrf.mxu3 }
 0x1d8   : > { %v1113_v28 = vadd.f32 %v1112_v13, %v1089_v52 }
 0x1da   : > { %v1137_v54 = vadd.f32 %v1136_v48, %v1113_v28 }
 0x1dc   : > { %vm1150_vm15 = vcmp.ge.f32.partialorder %v1137_v54, 0.0  ;;  %v1156_v57 = vmul.f32 0.22916667, %v1137_v54 }
 0x1de   : > { %v1162_v60 = vsel %vm1150_vm15, %v1137_v54, %v1156_v57 }
 0x1df   : > { %v1167_v62 = vsel %vm907_vm10, %v1162_v60, -inf  ;;  %v1115_v63 = vpop.f32.mrf.mxu3  ;;  %v1176_v15 = vsel %vm1175_vm0, %v1162_v60, -inf }
 0x1e0   : > { %v1168_v0 = vmax.f32 %v1161_v61, %v1167_v62  ;;  %v1116_v2 = vadd.f32 %v1115_v63, %v1092_v59 }
 0x1e2   : > { %v1169_v4 = vrot.slane %v1168_v0, 4  ;;  %v1140_v6 = vadd.f32 %v1139_v55, %v1116_v2 }
 0x1e4   : > { %v1170_v10 = vmax.f32 %v1168_v0, %v1169_v4  ;;  %vm1151_vm1 = vcmp.ge.f32.partialorder %v1140_v6, 0.0  ;;  %v1157_v11 = vmul.f32 0.22916667, %v1140_v6  ;;  %v1735_v0 = vld [vmem:[%s2275_s6] ss:$0 sm:$0xff] }
 0x1e6   : > { %v1163_v1 = vsel %vm1151_vm1, %v1140_v6, %v1157_v11  ;;  %v1171_v16 = vrot.slane %v1170_v10, 2 }
 0x1e7   : > { %v1177_v17 = vmax.f32 %v1176_v15, %v1163_v1  ;;  %v1117_v18 = vpop.f32.mrf.mxu3 }
 0x1e8   : > { %v1118_v5 = vadd.f32 %v1117_v18, %v1094_v20  ;;  %v1172_v25 = vmax.f32 %v1170_v10, %v1171_v16 }
 0x1e9   : > { %v1178_v21 = vrot.slane %v1177_v17, 4 }
 0x1ea   : > { %v1142_v31 = vadd.f32 %v1141_v12, %v1118_v5  ;;  %v1173_v32 = vrot.slane %v1172_v25, 1 }
 0x1eb   : > { %v1179_v3 = vmax.f32 %v1177_v17, %v1178_v21 }
 0x1ec   : > { %v1158_v36 = vmul.f32 0.22916667, %v1142_v31  ;;  %v1174_v7 = vmax.f32 %v1172_v25, %v1173_v32  ;;  %vm1152_vm3 = vcmp.ge.f32.partialorder %v1142_v31, 0.0 }
 0x1ed   : > { %v1180_v26 = vrot.slane %v1179_v3, 2 }
 0x1ee   : > { %v1164_v44 = vsel %vm1152_vm3, %v1142_v31, %v1158_v36 }
 0x1ef   : > { %v1181_v30 = vmax.f32 %v1179_v3, %v1180_v26  ;;  %v1120_v24 = vpop.f32.mrf.mxu3 }
 0x1f0   : > { %v1121_v33 = vadd.f32 %v1120_v24, %v1097_v22 }
 0x1f1   : > { %v1182_v34 = vrot.slane %v1181_v30, 1 }
 0x1f2   : > { %v1145_v35 = vadd.f32 %v1144_v27, %v1121_v33 }
 0x1f3   : > { %v1183_v37 = vmax.f32 %v1181_v30, %v1182_v34 }
 0x1f4   : > { %vm1153_vm4 = vcmp.ge.f32.partialorder %v1145_v35, 0.0  ;;  %v1159_v29 = vmul.f32 0.22916667, %v1145_v35 }
 0x1f5   : > { %v1201_v39 = vsel %vm1200_vm2, %v1174_v7, %v1183_v37 }
 0x1f6   : > { %v1165_v38 = vsel %vm1153_vm4, %v1145_v35, %v1159_v29 }
 0x1f7   : > { %v1184_v45 = vsel %vm907_vm10, %v1165_v38, -inf  ;;  %v1122_v46 = vpop.f32.mrf.mxu3  ;;  %v1192_v13 = vsel %vm1175_vm0, %v1165_v38, -inf }
 0x1f8   : > { %v1185_v47 = vmax.f32 %v1164_v44, %v1184_v45  ;;  %v1123_v48 = vadd.f32 %v1122_v46, %v1099_v41 }
 0x1fa   : > { %v1186_v50 = vrot.slane %v1185_v47, 4  ;;  %v1147_v51 = vadd.f32 %v1146_v49, %v1123_v48 }
 0x1fc   : > { %v1187_v52 = vmax.f32 %v1185_v47, %v1186_v50  ;;  %vm1154_vm5 = vcmp.ge.f32.partialorder %v1147_v51, 0.0  ;;  %v1160_v53 = vmul.f32 0.22916667, %v1147_v51 }
 0x1fe   : > { %v1166_v28 = vsel %vm1154_vm5, %v1147_v51, %v1160_v53  ;;  %v1188_v54 = vrot.slane %v1187_v52, 2 }
 0x1ff   : > { %v1193_v42 = vmax.f32 %v1192_v13, %v1166_v28 }
 0x200   : > { %v1189_v43 = vmax.f32 %v1187_v52, %v1188_v54 }
 0x201   : > { %v1194_v55 = vrot.slane %v1193_v42, 4 }
 0x202   : > { %v1190_v57 = vrot.slane %v1189_v43, 1 }
 0x203   : > { %v1195_v56 = vmax.f32 %v1193_v42, %v1194_v55 }
 0x204   : > { %v1191_v59 = vmax.f32 %v1189_v43, %v1190_v57 }
 0x205   : > { %v1196_v40 = vrot.slane %v1195_v56, 2 }
 0x206   : > { %v1202_v62 = vsel %vm920_vm12, %v1201_v39, %v1191_v59 }
 0x207   : > { %v1197_v58 = vmax.f32 %v1195_v56, %v1196_v40 }
 0x209   : > { %v1198_v60 = vrot.slane %v1197_v58, 1 }
 0x20b   : > { %v1199_v61 = vmax.f32 %v1197_v58, %v1198_v60 }
 0x20d   : > { %v1204_v63 = vsel %vm881_vm8, %v1202_v62, %v1199_v61 }
 0x20e   : > { %1241 = vmatmul.f32.vlgmr.msrb.gmra.mxu1 %v1204_v63 }
 0x28b   : > { %v1242_v2 = vpop.f32.mrf.mxu1 }
 0x28c   : > { %v1243_v4 = vadd.f32 %v1735_v0, %v1242_v2 }
 0x28e   : > { %1245 = vst [vmem:[%s349_s20] sm:$0xf] %v1243_v4 }
 0x28f   : > { %1883 = shalt.err (!%p1880_p10)
}
 0x290   : > { %1666 = dma.vmem_to_hbm [thread:$0]  (%p2067_p3), %s1260_s1, 64, %s1262_s9, %s1247_s30  }
 0x291 PF: > { %s1273_s29 = sand.u32 1, %s1918_s24   ;;  %p2289_p12 = scmp.ge.s32.totalorder %s1930_s27, 2 }
 0x292   : > { %s1274_s10 = scalar_lea.sflag [#allocation4], %s1273_s29 }
 0x293   : > { %p1683_p13 = pnand %p2289_p12, %p2014_p6 }
 0x295   : > { %p1684_p0 = pneg %p1683_p13 }
 0x297   : > { %1913 = dma.done.wait (%p1684_p0), %s1274_s10, 64  }
 0x298   : > { %1915 = vsyncadd (%p1684_p0), %s1274_s10, 4294967232  ;;  %p22_p5 = scmp.ge.s32.totalorder %s2054_s16, 4   ;;  %s2290_s24 = smov %s1922_s25 }
 0x299   : > { %s2291_s25 = smov %s1926_s26  ;;  %s2292_s26 = smov %s2063_s23 }
 0x29a   : > { %s2293_s27 = smov %s2054_s16  ;;  %24 = sbr.rel (!%p22_p5) target bundleno = 9 (0x9), region = 105 }
 0x29f   :  { %1280 = vsyncpa [#allocation3], 1 }
 0x2a0   :  { %1282 = vsyncpa [#allocation3 + $0x1], 1 }
 0x2a1   :  { %1283 = vsyncpa [#allocation6], 1 }
 0x2a2   :  { %1284 = vsyncpa [#allocation9], 1 }
 0x2a3   :  { %1285 = vsyncpa [#allocation4], 1 }
 0x2a4   :  { %1287 = vsyncpa [#allocation4 + $0x1], 1 }

</bundles_post_ra>
